<compile_context>
chip_gen: v7x
topology: tpu7x:2x2x1
jax: 0.10.0
libtpu: 0.0.40
codegen_flags: <defaults>
</compile_context>

<pallas_src>
import functools

import jax
import jax.numpy as jnp
from jax.experimental import pallas as pl
from jax.experimental.pallas import tpu as pltpu


def _attention_kernel(x_ref, w_ref, b_ref, o_ref, *, C, TQ, HW_VALID):
    # x_ref : (1, C, HWp) f32   full (padded) pixels for this batch element
    # w_ref : (2C, C)     f32   [A ; Wv]   with A = Wk^T Wq / sqrt(E)
    # b_ref : (2C, 1)     f32   [g ; bv]   with g = Wk^T bq / sqrt(E)
    # o_ref : (1, C, HWp) f32   resident accumulator across query tiles (x + prompt)
    qi = pl.program_id(1)
    hw_pad = x_ref.shape[2]

    x_full = x_ref[0]                                        # (C, HWp)
    start = pl.multiple_of(qi * TQ, 128)
    x_tile = x_ref[0, :, pl.ds(start, TQ)]                   # (C, TQ)

    # Fused score-feed + value projection on the tile (tiny (2C,C)@(C,TQ), f32).
    sv = jnp.dot(w_ref[...], x_tile, preferred_element_type=jnp.float32) + b_ref[...]
    s_t = sv[:C, :]                                          # (C, TQ): A x_i + g
    v_t = sv[C:, :]                                          # (C, TQ): Wv x_i + bv

    # scores[i, j] = q_i . k_j / sqrt(E)  (up to a per-row constant that cancels in softmax)
    scores = jax.lax.dot_general(
        s_t.astype(jnp.bfloat16), x_full.astype(jnp.bfloat16),
        dimension_numbers=(((0,), (0,)), ((), ())),
        preferred_element_type=jnp.float32,
    )                                                        # (TQ, HWp) f32

    if HW_VALID < hw_pad:                                    # static: only when padded
        col = jax.lax.broadcasted_iota(jnp.int32, (1, hw_pad), 1)
        scores = jnp.where(col < HW_VALID, scores, jnp.float32(-1e30))
        row = start + jax.lax.broadcasted_iota(jnp.int32, (1, TQ), 1)
        v_t = jnp.where(row < HW_VALID, v_t, jnp.float32(0.0))

    # softmax over the key dim (lane dim), numerically stabilized, f32
    scores = scores - jnp.max(scores, axis=-1, keepdims=True)
    e = jnp.exp(scores)
    attn = e * pl.reciprocal(jnp.sum(e, axis=-1, keepdims=True), approx=True)

    # prompt[c, j] += sum_{i in tile} v[c, i] * attn[i, j]
    contrib = jnp.dot(v_t.astype(jnp.bfloat16), attn.astype(jnp.bfloat16),
                      preferred_element_type=jnp.float32)    # (C, HWp)

    @pl.when(qi == 0)
    def _():
        o_ref[0] = x_full + contrib          # residual added at init

    @pl.when(qi > 0)
    def _():
        o_ref[0] = o_ref[0] + contrib


def _tile_and_vmem(hw_pad, c):
    """Pick the largest lane-aligned query tile that fits the VMEM budget.

    Live per-step VMEM ~ 3 f32 + 1 bf16 (TQ, HWp) temporaries (scores / exp / attn / bf16
    copy) plus the double-buffered (C, HWp) f32 x and out blocks.  Budget 36 MiB keeps us
    well inside v7x's 64 MiB physical VMEM (and the scoped defaults everywhere once
    vmem_limit_bytes is raised).
    """
    budget = 36 * 1024 * 1024
    fixed = 4 * c * hw_pad * 4                       # x block + out block, 2 buffers each
    tq = 128
    for cand in (1024, 512, 384, 256, 128):
        if hw_pad % cand:
            continue
        if fixed + cand * hw_pad * (3 * 4 + 2) <= budget:
            tq = cand
            break
    # TODO(synk): for extremely large HW even TQ=128 exceeds the budget; that would need a
    # key-tiled two-pass softmax formulation (softmax axis == output axis here).
    live = tq * hw_pad * (3 * 4 + 2)
    vmem_limit = int(min(56 * 1024 * 1024, max(32 * 1024 * 1024, 1.5 * (fixed + live))))
    return tq, vmem_limit


def prompt_self_attention(x_nchw, params):
    """x_nchw: (B, C, H, W) float32; params: dict of 1x1-conv weights/biases."""
    B, C, H, W = x_nchw.shape
    HW = H * W
    hw_pad = ((HW + 127) // 128) * 128
    E = params["wq"].shape[0]

    # NCHW -> (B, C, HW): pure reshape; HW (padded to a lane multiple) is the lane dim.
    x = x_nchw.reshape(B, C, HW).astype(jnp.float32)
    if hw_pad != HW:
        x = jnp.pad(x, ((0, 0), (0, 0), (0, hw_pad - HW)))

    scale = 1.0 / (float(E) ** 0.5)
    wq = params["wq"].reshape(E, C).astype(jnp.float32)
    bq = params["bq"].reshape(E, 1).astype(jnp.float32)
    wk = params["wk"].reshape(E, C).astype(jnp.float32)
    wv = params["wv"].reshape(C, C).astype(jnp.float32)
    bv = params["bv"].reshape(C, 1).astype(jnp.float32)
    # bk only contributes a per-row constant to the scores -> cancels in softmax.

    A = (wk.T @ wq) * scale                       # (C, C)  score kernel
    g = (wk.T @ bq) * scale                       # (C, 1)  key-side bias term
    w_sv = jnp.concatenate([A, wv], axis=0)       # (2C, C)
    b_sv = jnp.concatenate([g, bv], axis=0)       # (2C, 1)

    TQ, vmem_limit = _tile_and_vmem(hw_pad, C)
    NQ = hw_pad // TQ

    kernel = functools.partial(_attention_kernel, C=C, TQ=TQ, HW_VALID=HW)

    out = pl.pallas_call(
        kernel,
        out_shape=jax.ShapeDtypeStruct((B, C, hw_pad), jnp.float32),
        grid_spec=pltpu.PrefetchScalarGridSpec(
            num_scalar_prefetch=0,
            grid=(B, NQ),
            in_specs=[
                pl.BlockSpec((1, C, hw_pad), lambda b, qi: (b, 0, 0)),   # x (full, per batch)
                pl.BlockSpec((2 * C, C), lambda b, qi: (0, 0)),          # [A ; Wv]
                pl.BlockSpec((2 * C, 1), lambda b, qi: (0, 0)),          # [g ; bv]
            ],
            out_specs=pl.BlockSpec((1, C, hw_pad), lambda b, qi: (b, 0, 0)),
        ),
        compiler_params=pltpu.CompilerParams(
            dimension_semantics=("parallel", "arbitrary"),
            vmem_limit_bytes=vmem_limit,
        ),
    )(x, w_sv, b_sv)

    if hw_pad != HW:
        out = out[:, :, :HW]
    return out.reshape(B, C, H, W)


def _xavier_uniform_conv1x1(key, out_c, in_c):
    # matches nn.init.xavier_uniform_ for a (out, in, 1, 1) conv weight
    fan_in, fan_out = in_c, out_c
    bound = (6.0 / (fan_in + fan_out)) ** 0.5
    return jax.random.uniform(key, (out_c, in_c, 1, 1), jnp.float32, -bound, bound)


def _reference(x, params):
    # pure-JAX reference of the PyTorch forward (for correctness checking)
    B, C, H, W = x.shape
    HW = H * W
    xf = x.reshape(B, C, HW)

    def conv1x1(w, b):
        return jnp.einsum("oc,bch->boh", w.reshape(w.shape[0], C), xf) + b[None, :, None]

    q = conv1x1(params["wq"], params["bq"])          # (B, E, HW)
    k = conv1x1(params["wk"], params["bk"])          # (B, E, HW)
    v = conv1x1(params["wv"], params["bv"])          # (B, C, HW)
    scores = jnp.einsum("bei,bej->bij", q, k) / jnp.sqrt(jnp.float32(q.shape[1]))
    attn = jax.nn.softmax(scores, axis=-1)
    prompt = jnp.einsum("bci,bij->bcj", v, attn).reshape(B, C, H, W)
    return x + prompt


def _make_params(key, C, E):
    k_q, k_k, k_v = jax.random.split(key, 3)
    return {
        "wq": _xavier_uniform_conv1x1(k_q, E, C), "bq": jnp.zeros((E,), jnp.float32),
        "wk": _xavier_uniform_conv1x1(k_k, E, C), "bk": jnp.zeros((E,), jnp.float32),
        "wv": _xavier_uniform_conv1x1(k_v, C, C), "bv": jnp.zeros((C,), jnp.float32),
    }


if __name__ == "__main__":
    # TODO(synk): the PyTorch forward requires `prompted_params` (it indexes a None dict
    # otherwise and calls the conv with a non-existent `images=` kwarg); here we use the
    # module's own deterministically-initialized parameters with the intended semantics.
    key = jax.random.PRNGKey(0)
    k_x1, k_x2, k_p = jax.random.split(key, 3)

    C, E = 3, 64                       # in_channels=3, embed_dim=64 fixed by the module
    params = {k: v for k, v in _make_params(k_p, C, E).items()}

    # Case 1: HW a multiple of 128 (lane-dense fast path)
    B, H, W = 2, 16, 16
    x1 = jax.random.normal(k_x1, (B, C, H, W), jnp.float32)
    out1 = jax.block_until_ready(prompt_self_attention(x1, params))
    ref1 = _reference(x1, params)
    assert out1.shape == (B, C, H, W)
    err1 = float(jnp.max(jnp.abs(out1 - ref1)))
    assert jnp.allclose(out1, ref1, atol=1e-2, rtol=1e-2), f"mismatch (case 1, max err {err1})"

    # Case 2: HW not a multiple of 128 (exercises the padding + masking path)
    B2, H2, W2 = 2, 10, 10
    x2 = jax.random.normal(k_x2, (B2, C, H2, W2), jnp.float32)
    out2 = jax.block_until_ready(prompt_self_attention(x2, params))
    ref2 = _reference(x2, params)
    assert out2.shape == (B2, C, H2, W2)
    err2 = float(jnp.max(jnp.abs(out2 - ref2)))
    assert jnp.allclose(out2, ref2, atol=1e-2, rtol=1e-2), f"mismatch (case 2, max err {err2})"

    print("KERNEL_OK")
</pallas_src>

<mosaic_0001>
module attributes {stable_mosaic.version = 11 : i64} {
  func.func @_attention_kernel(%arg0: i32, %arg1: i32, %arg2: memref<1x3x256xf32, #tpu.memory_space<vmem>>, %arg3: memref<6x3xf32, #tpu.memory_space<vmem>>, %arg4: memref<6x1xf32, #tpu.memory_space<vmem>>, %arg5: memref<1x3x256xf32, #tpu.memory_space<vmem>>) attributes {dimension_semantics = [#tpu.dimension_semantics<parallel>, #tpu.dimension_semantics<arbitrary>], iteration_bounds = array<i64: 2, 1>, scalar_prefetch = 0 : i64, scratch_operands = 0 : i64, tpu.core_type = #tpu.core_type<tc>, window_params = [{transform_indices = @transform_0, window_bounds = array<i64: 1, 3, 256>}, {pipeline_mode = #tpu.pipeline_mode<synchronous>, transform_indices = @transform_1, window_bounds = array<i64: 6, 3>}, {pipeline_mode = #tpu.pipeline_mode<synchronous>, transform_indices = @transform_2, window_bounds = array<i64: 6, 1>}, {transform_indices = @transform_3, window_bounds = array<i64: 1, 3, 256>}]} {
    %c0 = arith.constant 0 : index
    %c0_0 = arith.constant 0 : index
    %c0_1 = arith.constant 0 : index
    %0 = vector.load %arg2[%c0, %c0_0, %c0_1] : memref<1x3x256xf32, #tpu.memory_space<vmem>>, vector<1x3x256xf32>
    %1 = vector.shape_cast %0 : vector<1x3x256xf32> to vector<3x256xf32>
    %c256_i32 = arith.constant 256 : i32
    %2 = arith.muli %arg1, %c256_i32 : i32
    %3 = tpu.assume_multiple %2, 128 : i32
    %c0_2 = arith.constant 0 : index
    %c0_3 = arith.constant 0 : index
    %4 = arith.index_cast %3 : i32 to index
    %5 = vector.load %arg2[%c0_2, %c0_3, %4] : memref<1x3x256xf32, #tpu.memory_space<vmem>>, vector<1x3x256xf32>
    %6 = vector.shape_cast %5 : vector<1x3x256xf32> to vector<3x256xf32>
    %c0_4 = arith.constant 0 : index
    %c0_5 = arith.constant 0 : index
    %7 = vector.load %arg3[%c0_4, %c0_5] : memref<6x3xf32, #tpu.memory_space<vmem>>, vector<6x3xf32>
    %cst = arith.constant dense<0.000000e+00> : vector<6x256xf32>
    %8 = tpu.matmul %7, %6, %cst {dimension_numbers = #tpu.dot_dimension_numbers<[1], [0], [0], [1], [0, 0, 1, 1], [], []>} : vector<6x3xf32>, vector<3x256xf32>, vector<6x256xf32> -> vector<6x256xf32>
    %c0_6 = arith.constant 0 : index
    %c0_7 = arith.constant 0 : index
    %9 = vector.load %arg4[%c0_6, %c0_7] : memref<6x1xf32, #tpu.memory_space<vmem>>, vector<6x1xf32>
    %10 = vector.broadcast %9 : vector<6x1xf32> to vector<6x256xf32>
    %11 = arith.addf %8, %10 : vector<6x256xf32>
    %12 = vector.extract_strided_slice %11 {offsets = [0, 0], sizes = [3, 256], strides = [1, 1]} : vector<6x256xf32> to vector<3x256xf32>
    %13 = vector.extract_strided_slice %11 {offsets = [3, 0], sizes = [3, 256], strides = [1, 1]} : vector<6x256xf32> to vector<3x256xf32>
    %14 = arith.truncf %12 : vector<3x256xf32> to vector<3x256xbf16>
    %15 = arith.truncf %1 : vector<3x256xf32> to vector<3x256xbf16>
    %cst_8 = arith.constant dense<0.000000e+00> : vector<256x256xf32>
    %16 = tpu.matmul %14, %15, %cst_8 {dimension_numbers = #tpu.dot_dimension_numbers<[0], [0], [1], [1], [0, 1, 1, 1], [], []>} : vector<3x256xbf16>, vector<3x256xbf16>, vector<256x256xf32> -> vector<256x256xf32>
    %cst_9 = arith.constant dense<0xFF800000> : vector<256xf32>
    %17 = vector.multi_reduction <maximumf>, %16, %cst_9 [1] : vector<256x256xf32> to vector<256xf32>
    %18 = vector.shape_cast %17 : vector<256xf32> to vector<256x1xf32>
    %19 = vector.broadcast %18 : vector<256x1xf32> to vector<256x256xf32>
    %20 = arith.subf %16, %19 : vector<256x256xf32>
    %21 = math.exp %20 : vector<256x256xf32>
    %cst_10 = arith.constant dense<0.000000e+00> : vector<256xf32>
    %22 = vector.multi_reduction <add>, %21, %cst_10 [1] : vector<256x256xf32> to vector<256xf32>
    %23 = vector.shape_cast %22 : vector<256xf32> to vector<256x1xf32>
    %24 = tpu.reciprocal %23 {approx = true} : vector<256x1xf32> -> vector<256x1xf32>
    %25 = vector.broadcast %24 : vector<256x1xf32> to vector<256x256xf32>
    %26 = arith.mulf %21, %25 : vector<256x256xf32>
    %27 = arith.truncf %13 : vector<3x256xf32> to vector<3x256xbf16>
    %28 = arith.truncf %26 : vector<256x256xf32> to vector<256x256xbf16>
    %cst_11 = arith.constant dense<0.000000e+00> : vector<3x256xf32>
    %29 = tpu.matmul %27, %28, %cst_11 {dimension_numbers = #tpu.dot_dimension_numbers<[1], [0], [0], [1], [0, 0, 1, 1], [], []>} : vector<3x256xbf16>, vector<256x256xbf16>, vector<3x256xf32> -> vector<3x256xf32>
    %c0_i32 = arith.constant 0 : i32
    %30 = arith.cmpi eq, %arg1, %c0_i32 : i32
    %31 = arith.extui %30 : i1 to i32
    %c0_i32_12 = arith.constant 0 : i32
    %32 = arith.cmpi ne, %31, %c0_i32_12 : i32
    scf.if %32 {
      %36 = arith.addf %1, %29 : vector<3x256xf32>
      %c0_15 = arith.constant 0 : index
      %c0_16 = arith.constant 0 : index
      %c0_17 = arith.constant 0 : index
      %37 = vector.load %arg5[%c0_15, %c0_16, %c0_17] : memref<1x3x256xf32, #tpu.memory_space<vmem>>, vector<1x3x256xf32>
      %38 = vector.shape_cast %37 : vector<1x3x256xf32> to vector<3x256xf32>
      %39 = vector.shape_cast %36 : vector<3x256xf32> to vector<1x3x256xf32>
      tpu.vector_store %arg5[%c0_15, %c0_16, %c0_17], %39 {strides = array<i32>} : memref<1x3x256xf32, #tpu.memory_space<vmem>>, vector<1x3x256xf32>,
    } else {
    }
    %c0_i32_13 = arith.constant 0 : i32
    %33 = arith.cmpi sgt, %arg1, %c0_i32_13 : i32
    %34 = arith.extui %33 : i1 to i32
    %c0_i32_14 = arith.constant 0 : i32
    %35 = arith.cmpi ne, %34, %c0_i32_14 : i32
    scf.if %35 {
      %c0_15 = arith.constant 0 : index
      %c0_16 = arith.constant 0 : index
      %c0_17 = arith.constant 0 : index
      %36 = vector.load %arg5[%c0_15, %c0_16, %c0_17] : memref<1x3x256xf32, #tpu.memory_space<vmem>>, vector<1x3x256xf32>
      %37 = vector.shape_cast %36 : vector<1x3x256xf32> to vector<3x256xf32>
      %38 = arith.addf %37, %29 : vector<3x256xf32>
      %c0_18 = arith.constant 0 : index
      %c0_19 = arith.constant 0 : index
      %c0_20 = arith.constant 0 : index
      %39 = vector.load %arg5[%c0_18, %c0_19, %c0_20] : memref<1x3x256xf32, #tpu.memory_space<vmem>>, vector<1x3x256xf32>
      %40 = vector.shape_cast %39 : vector<1x3x256xf32> to vector<3x256xf32>
      %41 = vector.shape_cast %38 : vector<3x256xf32> to vector<1x3x256xf32>
      tpu.vector_store %arg5[%c0_18, %c0_19, %c0_20], %41 {strides = array<i32>} : memref<1x3x256xf32, #tpu.memory_space<vmem>>, vector<1x3x256xf32>,
    } else {
    }
    return
  }
  func.func @transform_0(%arg0: i32, %arg1: i32) -> (i32, i32, i32) {
    %c0_i32 = arith.constant 0 : i32
    %c0_i32_0 = arith.constant 0 : i32
    %c0_i32_1 = arith.constant 0 : i32
    return %arg0, %c0_i32, %c0_i32_0 : i32, i32, i32
  }
  func.func @transform_1(%arg0: i32, %arg1: i32) -> (i32, i32) {
    %c0_i32 = arith.constant 0 : i32
    %c0_i32_0 = arith.constant 0 : i32
    %c0_i32_1 = arith.constant 0 : i32
    return %c0_i32, %c0_i32_0 : i32, i32
  }
  func.func @transform_2(%arg0: i32, %arg1: i32) -> (i32, i32) {
    %c0_i32 = arith.constant 0 : i32
    %c0_i32_0 = arith.constant 0 : i32
    %c0_i32_1 = arith.constant 0 : i32
    return %c0_i32, %c0_i32_0 : i32, i32
  }
  func.func @transform_3(%arg0: i32, %arg1: i32) -> (i32, i32, i32) {
    %c0_i32 = arith.constant 0 : i32
    %c0_i32_0 = arith.constant 0 : i32
    %c0_i32_1 = arith.constant 0 : i32
    return %arg0, %c0_i32, %c0_i32_0 : i32, i32, i32
  }
}

</mosaic_0001>

<bundles_post_ra>
// kernel: tpu_custom_call.1
= control target key start
LH: loop header
LB: loop body
LE: loop exit
PB: predicated region body
PF: predicated region fallthrough
CT: control target
= control target key end

     0   :  { %s1529_s12 = smov 0   ;;  %s1531_s13 = smov 0   ;;  %s2131_s0 = inlined_call_operand.vmem [shape: f32[2,3,256], index: 0, kind: input, shape index: {}]   ;;  %s2132_s1 = inlined_call_operand.vmem [shape: f32[6,3], index: 1, kind: input, shape index: {}]   ;;  %s2133_s2 = inlined_call_operand.vmem [shape: f32[6,1], index: 2, kind: input, shape index: {}]   ;;  %s2134_s3 = inlined_call_operand.vmem [shape: f32[2,3,256], index: 3, kind: output, shape index: {}]  }
   0x1   :  { %s1533_s14 = smov 0  }
   0x2 LB: > { %s25_s15 = sadd.s32 1, %s1500_s13  ;;  %p1231_p0 = scmp.ge.s32.totalorder %s1504_s14, 1  ;;  %s1504_s14 = sphi %s1533_s14, %s13_s14   ;;  %s1500_s13 = sphi %s1531_s13, %s2221_s13   ;;  %s1496_s12 = sphi %s1529_s12, %s2220_s12  }
   0x3   : > { %p27_p1 = scmp.ge.s32.totalorder %s25_s15, 2  ;;  %p149_p2 = scmp.lt.s32.totalorder %s1504_s14, 3 }
   0x5   : > { %s2223_s15 = smov (%p27_p1, %s25_s15), 0  ;;  %p150_p3 = pnand %p1231_p0, %p149_p2 }
   0x7   : > { %153 = sbr.rel (%p150_p3) target bundleno = 1219 (0x4c3), region = 32 }
   0xe   : > { %p173_p4 = scmp.lt.s32.totalorder %s1496_s12, 1  ;;  %v1506_v0 = vmov 0.0   ;;  %v192_v1 = vld [vmem:[%s2133_s2] sm:$0x3f]  ;;  %v1507_v2 = vmov 0   ;;  %vm204_vm0 = vcmask 1042432  }
   0xf   : > { %273 = vmatprep.mubr.f32.mxu0 %v1506_v0  ;;  %1286 = vset.pattern.permute.xlu0 %v1507_v2  ;;  %v191_v5 = vld [vmem:[%s2132_s1] sm:$0x3f]  ;;  %vm200_vm1 = vcmask 23552   ;;  %vm367_vm2 = vcmask 1040384   ;;  %vm368_vm3 = vcmask 1041408   ;;  %v1508_v8 = vmov 65535  }
  0x10   : > { %s2225_s12 = smov (!%p173_p4, %s1496_s12), 1  ;;  %409 = vmatprep.mubr.bf16.mxu1 %v1507_v2  ;;  %195 = vperm.xlu0 %1286, %v192_v1   ;;  %v369_v9 = vsel %vm367_vm2, 4294967295, %v1508_v8 }
  0x11   : > { %s1257_s18 = sshll.u32 %s2225_s12, 3  ;;  %v370_v12 = vsel %vm368_vm3, %v369_v9, 0 }
  0x12   : > { %s1560_s21 = scalar_lea.vmem %s2131_s0, %s1257_s18  ;;  %s182_s26 = scalar_lea.vmem %s2134_s3, %s1257_s18 }
  0x13   : > { %v190_v3 = vld [vmem:[%s1560_s21] sm:$0x77] }
  0x14   : > { %v199_v4 = vcombine.high %v190_v3, %v190_v3  ;;  %v184_v6 = vld [vmem:[%s1560_s21] sm:$0x77] }
  0x15   : > { %v283_v7 = vcombine.high %v184_v6, %v184_v6  ;;  %v285_v10 = vpack.c.bf16 %v184_v6, %v184_v6 }
  0x16   : > { %1236 = vmatprep.subr.msk.mxu0 %vm204_vm0, %v199_v4 }
  0x17   : > { %1237 = vmatpush1.msk.msra.mxu0 %vm204_vm0, %v190_v3  ;;  %v286_v11 = vpack.c.bf16 %v283_v7, %v283_v7  ;;  %v372_v13 = vand.u32 %v370_v12, %v285_v10 }
  0x18   : > { %1238 = vmatmul.mubr.msk.f32.vlgmr.msra.gmra.mrb[0].mxu0 %vm200_vm1, %v191_v5 }
  0x19   : > { %v375_v14 = vand.u32 %v370_v12, %v286_v11 }
  0x1b   : > { %377 = vmatprep.subr.bf16.mxu1 %v375_v14 }
  0x1c   : > { %378 = vmatpush1.bf16.msra.mxu1 %v372_v13 }
  0x8f   : > { %v196_v15 = vpop.permute.xlu0 %195 }
  0xeb   : > { %v275_v16 = vpop.f32.mrb[0].mxu0 }
  0xec   : > { %v276_v17 = vadd.f32 %v275_v16, %v196_v15  ;;  %v277_v18 = vpop.f32.mrb[1].mxu0 }
  0xed   : > { %v278_v19 = vadd.f32 %v277_v18, %v196_v15 }
  0xee   : > { %v1568_v20 = vpack.c.bf16 %v276_v17, %v276_v17 }
  0xef   : > { %v281_v21 = vpack.c.bf16 %v278_v19, %v278_v19 }
  0xf0   : > { %2164 = vst [vmem:[#allocation2_spill] sm:$0xff] %v1568_v20  ;;  %287 = vxpose.xlu0.c.b16.start.end [1/1] (short) %v1568_v20, 128 }
  0xf1   : > { %v1091_v22 = vshrl.u32 %v281_v21, 16  ;;  %v1094_v23 = vshll.u32 %v281_v21, 16  ;;  %303 = vxpose.xlu1.c.b16.start.end [1/1] (short) %v281_v21, 128 }
  0xf3   : > { %v1093_v24 = vrot.slane %v1091_v22, 1  ;;  %v1096_v25 = vrot.slane %v1094_v23, 2 }
  0xf5   : > { %v1097_v26 = vor.u32 %v1096_v25, %v1093_v24 }
  0xf7   : > { %1132 = vmatprep.mubr.bf16.mxu0 %v1097_v26 }
 0x156   : > { %v295_v27 = vpop.trf.xlu0 }
 0x157   : > { %1239 = vmatmul.mubr.msk.bf16.vlgmr.msra.gmra.mrb[0].mxu1 %vm200_vm1, %v295_v27  ;;  %v311_v35 = vpop.trf.xlu1 }
 0x158   : > { %419 = vmatprep.mubr.bf16.mxu1 %v1507_v2 }
 0x15a   : > { %v296_v28 = vpop.trf.xlu0 }
 0x15b   : > { %v312_v36 = vpop.trf.xlu1 }
 0x15e   : > { %v297_v29 = vpop.trf.xlu0 }
 0x15f   : > { %1240 = vmatmul.mubr.msk.bf16.gmra.mrb[4].mxu1 %vm200_vm1, %v296_v28  ;;  %v313_v37 = vpop.trf.xlu1 }
 0x160   : > { %429 = vmatprep.mubr.bf16.mxu1 %v1507_v2 }
 0x162   : > { %v298_v30 = vpop.trf.xlu0 }
 0x163   : > { %v314_v38 = vpop.trf.xlu1 }
 0x166   : > { %v299_v31 = vpop.trf.xlu0 }
 0x167   : > { %1241 = vmatmul.mubr.msk.bf16.gmra.mrb[8].mxu1 %vm200_vm1, %v297_v29  ;;  %v315_v39 = vpop.trf.xlu1 }
 0x168   : > { %439 = vmatprep.mubr.bf16.mxu1 %v1507_v2 }
 0x16a   : > { %v300_v32 = vpop.trf.xlu0 }
 0x16b   : > { %v316_v40 = vpop.trf.xlu1 }
 0x16e   : > { %v301_v33 = vpop.trf.xlu0 }
 0x16f   : > { %1242 = vmatmul.mubr.msk.bf16.gmra.mrb[12].mxu1 %vm200_vm1, %v298_v30  ;;  %v317_v41 = vpop.trf.xlu1 }
 0x170   : > { %449 = vmatprep.mubr.bf16.mxu1 %v1507_v2 }
 0x172   : > { %v302_v34 = vpop.trf.xlu0 }
 0x173   : > { %v318_v42 = vpop.trf.xlu1 }
 0x177   : > { %1243 = vmatmul.mubr.msk.bf16.gmra.mrb[16].mxu1 %vm200_vm1, %v299_v31 }
 0x178   : > { %459 = vmatprep.mubr.bf16.mxu1 %v1507_v2 }
 0x17f   : > { %1244 = vmatmul.mubr.msk.bf16.gmra.mrb[20].mxu1 %vm200_vm1, %v300_v32 }
 0x180   : > { %469 = vmatprep.mubr.bf16.mxu1 %v1507_v2 }
 0x187   : > { %1245 = vmatmul.mubr.msk.bf16.gmra.mrb[24].mxu1 %vm200_vm1, %v301_v33 }
 0x188   : > { %479 = vmatprep.mubr.bf16.mxu1 %v1507_v2 }
 0x18f   : > { %1246 = vmatmul.mubr.msk.bf16.gmra.mrb[28].mxu1 %vm200_vm1, %v302_v34 }
 0x190   : > { %489 = vmatprep.mubr.bf16.mxu1 %v1507_v2 }
 0x197   : > { %1247 = vmatmul.mubr.msk.bf16.gmra.mrb[32].mxu1 %vm200_vm1, %v311_v35 }
 0x198   : > { %499 = vmatprep.mubr.bf16.mxu1 %v1507_v2 }
 0x19f   : > { %1248 = vmatmul.mubr.msk.bf16.gmra.mrb[36].mxu1 %vm200_vm1, %v312_v36 }
 0x1a0   : > { %509 = vmatprep.mubr.bf16.mxu1 %v1507_v2 }
 0x1a7   : > { %1249 = vmatmul.mubr.msk.bf16.gmra.mrb[40].mxu1 %vm200_vm1, %v313_v37 }
 0x1a8   : > { %519 = vmatprep.mubr.bf16.mxu1 %v1507_v2 }
 0x1af   : > { %1250 = vmatmul.mubr.msk.bf16.gmra.mrb[44].mxu1 %vm200_vm1, %v314_v38 }
 0x1b0   : > { %529 = vmatprep.mubr.bf16.mxu1 %v1507_v2 }
 0x1b7   : > { %1251 = vmatmul.mubr.msk.bf16.gmra.mrb[48].mxu1 %vm200_vm1, %v315_v39 }
 0x1b8   : > { %539 = vmatprep.mubr.bf16.mxu1 %v1507_v2 }
 0x1bf   : > { %1252 = vmatmul.mubr.msk.bf16.gmra.mrb[52].mxu1 %vm200_vm1, %v316_v40 }
 0x1c0   : > { %549 = vmatprep.mubr.bf16.mxu1 %v1507_v2 }
 0x1c7   : > { %1253 = vmatmul.mubr.msk.bf16.gmra.mrb[56].mxu1 %vm200_vm1, %v317_v41 }
 0x1c8   : > { %559 = vmatprep.mubr.bf16.mxu1 %v1507_v2 }
 0x1cf   : > { %1254 = vmatmul.mubr.msk.bf16.gmra.mrb[60].mxu1 %vm200_vm1, %v318_v42 }
 0x22a   : > { %v1602_v43 = vpop.f32.mrb[0].mxu1 }
 0x22b   : > { %v1604_v44 = vpop.f32.mrb[1].mxu1 }
 0x22c   : > { %v1606_v45 = vpop.f32.mrb[2].mxu1  ;;  %v570_v46 = vmax.f32 %v1602_v43, %v1604_v44 }
 0x22d   : > { %v1610_v47 = vpop.f32.mrb[3].mxu1 }
 0x22e   : > { %571 = vmax.xlane.f32.xlu1 %v570_v46  ;;  %v573_v48 = vmax.f32 %v1606_v45, %v1610_v47 }
 0x230   : > { %574 = vmax.xlane.f32.xlu0 %v573_v48 }
 0x232   : > { %v1614_v49 = vpop.f32.mrb[4].mxu1 }
 0x233   : > { %v1616_v50 = vpop.f32.mrb[5].mxu1 }
 0x234   : > { %v1618_v51 = vpop.f32.mrb[6].mxu1  ;;  %v576_v52 = vmax.f32 %v1614_v49, %v1616_v50 }
 0x235   : > { %v1622_v53 = vpop.f32.mrb[7].mxu1 }
 0x236   : > { %577 = vmax.xlane.f32.xlu1 %v576_v52  ;;  %v579_v54 = vmax.f32 %v1618_v51, %v1622_v53 }
 0x23a   : > { %580 = vmax.xlane.f32.xlu1 %v579_v54  ;;  %v1626_v55 = vpop.f32.mrb[8].mxu1 }
 0x23b   : > { %v1628_v56 = vpop.f32.mrb[9].mxu1 }
 0x23c   : > { %v1630_v57 = vpop.f32.mrb[10].mxu1  ;;  %v582_v58 = vmax.f32 %v1626_v55, %v1628_v56 }
 0x23d   : > { %v1634_v59 = vpop.f32.mrb[11].mxu1 }
 0x23e   : > { %583 = vmax.xlane.f32.xlu1 %v582_v58  ;;  %v585_v60 = vmax.f32 %v1630_v57, %v1634_v59 }
 0x242   : > { %586 = vmax.xlane.f32.xlu1 %v585_v60  ;;  %v1638_v61 = vpop.f32.mrb[12].mxu1 }
 0x243   : > { %v1640_v62 = vpop.f32.mrb[13].mxu1 }
 0x244   : > { %v1642_v63 = vpop.f32.mrb[14].mxu1  ;;  %v588_v0 = vmax.f32 %v1638_v61, %v1640_v62 }
 0x245   : > { %v1646_v1 = vpop.f32.mrb[15].mxu1 }
 0x246   : > { %589 = vmax.xlane.f32.xlu1 %v588_v0  ;;  %v591_v2 = vmax.f32 %v1642_v63, %v1646_v1 }
 0x24a   : > { %592 = vmax.xlane.f32.xlu1 %v591_v2  ;;  %v1650_v3 = vpop.f32.mrb[16].mxu1 }
 0x24b   : > { %v1652_v4 = vpop.f32.mrb[17].mxu1 }
 0x24c   : > { %v1654_v5 = vpop.f32.mrb[18].mxu1  ;;  %v594_v6 = vmax.f32 %v1650_v3, %v1652_v4 }
 0x24d   : > { %v1658_v7 = vpop.f32.mrb[19].mxu1 }
 0x24e   : > { %595 = vmax.xlane.f32.xlu1 %v594_v6  ;;  %v597_v8 = vmax.f32 %v1654_v5, %v1658_v7 }
 0x252   : > { %598 = vmax.xlane.f32.xlu1 %v597_v8  ;;  %v1662_v9 = vpop.f32.mrb[20].mxu1 }
 0x253   : > { %v1664_v10 = vpop.f32.mrb[21].mxu1 }
 0x254   : > { %v1666_v11 = vpop.f32.mrb[22].mxu1  ;;  %v600_v12 = vmax.f32 %v1662_v9, %v1664_v10 }
 0x255   : > { %v1670_v13 = vpop.f32.mrb[23].mxu1 }
 0x256   : > { %601 = vmax.xlane.f32.xlu0 %v600_v12  ;;  %v603_v14 = vmax.f32 %v1666_v11, %v1670_v13 }
 0x258   : > { %604 = vmax.xlane.f32.xlu1 %v603_v14 }
 0x25a   : > { %v1674_v15 = vpop.f32.mrb[24].mxu1 }
 0x25b   : > { %v1676_v16 = vpop.f32.mrb[25].mxu1 }
 0x25c   : > { %v1678_v17 = vpop.f32.mrb[26].mxu1  ;;  %v606_v18 = vmax.f32 %v1674_v15, %v1676_v16 }
 0x25d   : > { %v1682_v19 = vpop.f32.mrb[27].mxu1 }
 0x25e   : > { %607 = vmax.xlane.f32.xlu0 %v606_v18  ;;  %v609_v21 = vmax.f32 %v1678_v17, %v1682_v19 }
 0x260   : > { %610 = vmax.xlane.f32.xlu1 %v609_v21 }
 0x262   : > { %v1686_v22 = vpop.f32.mrb[28].mxu1 }
 0x263   : > { %v1688_v23 = vpop.f32.mrb[29].mxu1 }
 0x264   : > { %v1690_v24 = vpop.f32.mrb[30].mxu1  ;;  %v612_v25 = vmax.f32 %v1686_v22, %v1688_v23 }
 0x265   : > { %v1694_v26 = vpop.f32.mrb[31].mxu1 }
 0x266   : > { %613 = vmax.xlane.f32.xlu0 %v612_v25  ;;  %v615_v27 = vmax.f32 %v1690_v24, %v1694_v26 }
 0x268   : > { %616 = vmax.xlane.f32.xlu1 %v615_v27 }
 0x26a   : > { %v1698_v28 = vpop.f32.mrb[32].mxu1 }
 0x26b   : > { %v1700_v29 = vpop.f32.mrb[33].mxu1 }
 0x26c   : > { %v1702_v30 = vpop.f32.mrb[34].mxu1  ;;  %v618_v31 = vmax.f32 %v1698_v28, %v1700_v29 }
 0x26d   : > { %v1706_v32 = vpop.f32.mrb[35].mxu1 }
 0x26e   : > { %619 = vmax.xlane.f32.xlu0 %v618_v31  ;;  %v621_v33 = vmax.f32 %v1702_v30, %v1706_v32 }
 0x270   : > { %622 = vmax.xlane.f32.xlu1 %v621_v33 }
 0x272   : > { %v1710_v34 = vpop.f32.mrb[36].mxu1 }
 0x273   : > { %v1712_v35 = vpop.f32.mrb[37].mxu1 }
 0x274   : > { %v1714_v36 = vpop.f32.mrb[38].mxu1  ;;  %v624_v37 = vmax.f32 %v1710_v34, %v1712_v35 }
 0x275   : > { %v1718_v38 = vpop.f32.mrb[39].mxu1 }
 0x276   : > { %625 = vmax.xlane.f32.xlu0 %v624_v37  ;;  %v627_v39 = vmax.f32 %v1714_v36, %v1718_v38 }
 0x278   : > { %628 = vmax.xlane.f32.xlu1 %v627_v39 }
 0x27a   : > { %v1722_v40 = vpop.f32.mrb[40].mxu1 }
 0x27b   : > { %v1724_v41 = vpop.f32.mrb[41].mxu1 }
 0x27c   : > { %v1726_v42 = vpop.f32.mrb[42].mxu1  ;;  %v630_v46 = vmax.f32 %v1722_v40, %v1724_v41 }
 0x27d   : > { %v1730_v48 = vpop.f32.mrb[43].mxu1 }
 0x27e   : > { %631 = vmax.xlane.f32.xlu0 %v630_v46  ;;  %v633_v52 = vmax.f32 %v1726_v42, %v1730_v48 }
 0x280   : > { %634 = vmax.xlane.f32.xlu1 %v633_v52 }
 0x282   : > { %v1734_v54 = vpop.f32.mrb[44].mxu1 }
 0x283   : > { %v1736_v58 = vpop.f32.mrb[45].mxu1 }
 0x284   : > { %v1738_v60 = vpop.f32.mrb[46].mxu1  ;;  %v636_v0 = vmax.f32 %v1734_v54, %v1736_v58 }
 0x285   : > { %v1742_v2 = vpop.f32.mrb[47].mxu1 }
 0x286   : > { %637 = vmax.xlane.f32.xlu0 %v636_v0  ;;  %v639_v6 = vmax.f32 %v1738_v60, %v1742_v2 }
 0x288   : > { %640 = vmax.xlane.f32.xlu1 %v639_v6 }
 0x28a   : > { %v1746_v8 = vpop.f32.mrb[48].mxu1 }
 0x28b   : > { %v1748_v12 = vpop.f32.mrb[49].mxu1 }
 0x28c   : > { %v1750_v14 = vpop.f32.mrb[50].mxu1  ;;  %v642_v18 = vmax.f32 %v1746_v8, %v1748_v12 }
 0x28d   : > { %2165 = vst [vmem:[#allocation3_spill] sm:$0xff] %v1750_v14  ;;  %v1754_v21 = vpop.f32.mrb[51].mxu1 }
 0x28e   : > { %2166 = vst [vmem:[#allocation4_spill] sm:$0xff] %v1754_v21  ;;  %643 = vmax.xlane.f32.xlu0 %v642_v18  ;;  %v645_v25 = vmax.f32 %v1750_v14, %v1754_v21 }
 0x290   : > { %646 = vmax.xlane.f32.xlu1 %v645_v25 }
 0x292   : > { %v1758_v27 = vpop.f32.mrb[52].mxu1 }
 0x293   : > { %2167 = vst [vmem:[#allocation5_spill] sm:$0xff] %v1758_v27  ;;  %v1760_v31 = vpop.f32.mrb[53].mxu1 }
 0x294   : > { %2168 = vst [vmem:[#allocation6_spill] sm:$0xff] %v1760_v31  ;;  %v1762_v33 = vpop.f32.mrb[54].mxu1  ;;  %v648_v37 = vmax.f32 %v1758_v27, %v1760_v31 }
 0x295   : > { %2169 = vst [vmem:[#allocation7_spill] sm:$0xff] %v1762_v33  ;;  %v1766_v39 = vpop.f32.mrb[55].mxu1 }
 0x296   : > { %2170 = vst [vmem:[#allocation8_spill] sm:$0xff] %v1766_v39  ;;  %649 = vmax.xlane.f32.xlu0 %v648_v37  ;;  %v651_v46 = vmax.f32 %v1762_v33, %v1766_v39 }
 0x298   : > { %652 = vmax.xlane.f32.xlu1 %v651_v46 }
 0x29a   : > { %v1770_v52 = vpop.f32.mrb[56].mxu1 }
 0x29b   : > { %2171 = vst [vmem:[#allocation9_spill] sm:$0xff] %v1770_v52  ;;  %v1772_v0 = vpop.f32.mrb[57].mxu1 }
 0x29c   : > { %2172 = vst [vmem:[#allocation10_spill] sm:$0xff] %v1772_v0  ;;  %v1774_v6 = vpop.f32.mrb[58].mxu1  ;;  %v654_v18 = vmax.f32 %v1770_v52, %v1772_v0 }
 0x29d   : > { %2173 = vst [vmem:[#allocation11_spill] sm:$0xff] %v1774_v6  ;;  %v1778_v25 = vpop.f32.mrb[59].mxu1 }
 0x29e   : > { %2174 = vst [vmem:[#allocation12_spill] sm:$0xff] %v1778_v25  ;;  %655 = vmax.xlane.f32.xlu0 %v654_v18  ;;  %v657_v20 = vmax.f32 %v1774_v6, %v1778_v25 }
 0x2a0   : > { %658 = vmax.xlane.f32.xlu1 %v657_v20 }
 0x2a2   : > { %v1782_v37 = vpop.f32.mrb[60].mxu1 }
 0x2a3   : > { %2175 = vst [vmem:[#allocation13_spill] sm:$0xff] %v1782_v37  ;;  %v1784_v39 = vpop.f32.mrb[61].mxu1 }
 0x2a4   : > { %2176 = vst [vmem:[#allocation14_spill] sm:$0xff] %v1784_v39  ;;  %v1786_v46 = vpop.f32.mrb[62].mxu1  ;;  %v660_v33 = vmax.f32 %v1782_v37, %v1784_v39 }
 0x2a5   : > { %v1790_v31 = vpop.f32.mrb[63].mxu1 }
 0x2a6   : > { %2177 = vst [vmem:[#allocation15_spill] sm:$0xff] %v1790_v31  ;;  %v663_v0 = vmax.f32 %v1786_v46, %v1790_v31  ;;  %661 = vmax.xlane.f32.xlu0 %v660_v33 }
 0x2a8   : > { %664 = vmax.xlane.f32.xlu1 %v663_v0 }
 0x2bb   : > { %v572_v18 = vpop.xlane.xlu1 %571 }
 0x2bc   : > { %v666_v25 = vsub.f32 %v1602_v43, %v572_v18  ;;  %v667_v20 = vsub.f32 %v1604_v44, %v572_v18 }
 0x2bd   : > { %v575_v6 = vpop.xlane.xlu0 %574 }
 0x2be   : > { %v730_v52 = vmul.f32 1.442695, %v666_v25  ;;  %v732_v27 = vmul.f32 1.442695, %v667_v20  ;;  %v668_v21 = vsub.f32 %v1606_v45, %v575_v6  ;;  %v669_v14 = vsub.f32 %v1610_v47, %v575_v6 }
 0x2c0   : > { %1289 = vpow2.f32 %v730_v52  ;;  %v734_v39 = vmul.f32 1.442695, %v668_v21  ;;  %v736_v37 = vmul.f32 1.442695, %v669_v14 }
 0x2c1   : > { %1291 = vpow2.f32 %v732_v27 }
 0x2c2   : > { %1293 = vpow2.f32 %v734_v39 }
 0x2c3   : > { %1295 = vpow2.f32 %v736_v37  ;;  %v578_v33 = vpop.xlane.xlu1 %577 }
 0x2c4   : > { %v670_v0 = vsub.f32 %v1614_v49, %v578_v33  ;;  %v671_v43 = vsub.f32 %v1616_v50, %v578_v33 }
 0x2c6   : > { %v738_v31 = vmul.f32 1.442695, %v670_v0  ;;  %v740_v44 = vmul.f32 1.442695, %v671_v43 }
 0x2c7   : > { %v581_v18 = vpop.xlane.xlu1 %580 }
 0x2c8   : > { %1297 = vpow2.f32 %v738_v31  ;;  %v672_v25 = vsub.f32 %v1618_v51, %v581_v18  ;;  %v673_v45 = vsub.f32 %v1622_v53, %v581_v18 }
 0x2c9   : > { %1299 = vpow2.f32 %v740_v44 }
 0x2ca   : > { %v1802_v47 = vpop.eup %1289  ;;  %v742_v14 = vmul.f32 1.442695, %v672_v25  ;;  %v744_v21 = vmul.f32 1.442695, %v673_v45 }
 0x2cb   : > { %v1804_v27 = vpop.eup %1291  ;;  %v584_v39 = vpop.xlane.xlu1 %583 }
 0x2cc   : > { %v1806_v52 = vpop.eup %1293  ;;  %1301 = vpow2.f32 %v742_v14  ;;  %v674_v49 = vsub.f32 %v1626_v55, %v584_v39  ;;  %v675_v50 = vsub.f32 %v1628_v56, %v584_v39  ;;  %v858_v51 = vadd.f32 %v1804_v27, %v1802_v47 }
 0x2cd   : > { %v1812_v31 = vpop.eup %1295  ;;  %1303 = vpow2.f32 %v744_v21 }
 0x2ce   : > { %v746_v53 = vmul.f32 1.442695, %v674_v49  ;;  %v748_v6 = vmul.f32 1.442695, %v675_v50  ;;  %859 = vadd.xlane.f32.xlu0 %v858_v51  ;;  %v861_v37 = vadd.f32 %v1812_v31, %v1806_v52 }
 0x2cf   : > { %v587_v20 = vpop.xlane.xlu1 %586 }
 0x2d0   : > { %1305 = vpow2.f32 %v746_v53  ;;  %v676_v33 = vsub.f32 %v1630_v57, %v587_v20  ;;  %v677_v55 = vsub.f32 %v1634_v59, %v587_v20  ;;  %862 = vadd.xlane.f32.xlu1 %v861_v37 }
 0x2d1   : > { %1307 = vpow2.f32 %v748_v6 }
 0x2d2   : > { %v1818_v56 = vpop.eup %1297  ;;  %v750_v0 = vmul.f32 1.442695, %v676_v33  ;;  %v752_v43 = vmul.f32 1.442695, %v677_v55 }
 0x2d3   : > { %v1820_v44 = vpop.eup %1299  ;;  %v590_v18 = vpop.xlane.xlu1 %589 }
 0x2d4   : > { %1309 = vpow2.f32 %v750_v0  ;;  %v678_v25 = vsub.f32 %v1638_v61, %v590_v18  ;;  %v679_v45 = vsub.f32 %v1640_v62, %v590_v18  ;;  %v864_v14 = vadd.f32 %v1820_v44, %v1818_v56 }
 0x2d5   : > { %1311 = vpow2.f32 %v752_v43 }
 0x2d6   : > { %v1826_v57 = vpop.eup %1301  ;;  %v754_v59 = vmul.f32 1.442695, %v678_v25  ;;  %v756_v21 = vmul.f32 1.442695, %v679_v45  ;;  %865 = vadd.xlane.f32.xlu0 %v864_v14 }
 0x2d7   : > { %v1828_v39 = vpop.eup %1303  ;;  %v593_v49 = vpop.xlane.xlu1 %592 }
 0x2d8   : > { %1313 = vpow2.f32 %v754_v59  ;;  %v680_v50 = vsub.f32 %v1642_v63, %v593_v49  ;;  %v681_v51 = vsub.f32 %v1646_v1, %v593_v49  ;;  %v867_v61 = vadd.f32 %v1828_v39, %v1826_v57 }
 0x2d9   : > { %1315 = vpow2.f32 %v756_v21 }
 0x2da   : > { %v1834_v62 = vpop.eup %1305  ;;  %v758_v53 = vmul.f32 1.442695, %v680_v50  ;;  %v760_v6 = vmul.f32 1.442695, %v681_v51  ;;  %868 = vadd.xlane.f32.xlu1 %v867_v61 }
 0x2db   : > { %v1836_v37 = vpop.eup %1307  ;;  %v596_v20 = vpop.xlane.xlu1 %595 }
 0x2dc   : > { %1317 = vpow2.f32 %v758_v53  ;;  %v682_v33 = vsub.f32 %v1650_v3, %v596_v20  ;;  %v683_v55 = vsub.f32 %v1652_v4, %v596_v20  ;;  %v870_v63 = vadd.f32 %v1836_v37, %v1834_v62 }
 0x2dd   : > { %1319 = vpow2.f32 %v760_v6 }
 0x2de   : > { %v1842_v1 = vpop.eup %1309  ;;  %v762_v0 = vmul.f32 1.442695, %v682_v33  ;;  %v764_v43 = vmul.f32 1.442695, %v683_v55  ;;  %871 = vadd.xlane.f32.xlu0 %v870_v63 }
 0x2df   : > { %v1844_v18 = vpop.eup %1311  ;;  %v599_v25 = vpop.xlane.xlu1 %598 }
 0x2e0   : > { %1321 = vpow2.f32 %v762_v0  ;;  %v684_v45 = vsub.f32 %v1654_v5, %v599_v25  ;;  %v685_v14 = vsub.f32 %v1658_v7, %v599_v25  ;;  %v873_v3 = vadd.f32 %v1844_v18, %v1842_v1 }
 0x2e1   : > { %1323 = vpow2.f32 %v764_v43 }
 0x2e2   : > { %v1850_v4 = vpop.eup %1313  ;;  %v766_v59 = vmul.f32 1.442695, %v684_v45  ;;  %v768_v21 = vmul.f32 1.442695, %v685_v14  ;;  %874 = vadd.xlane.f32.xlu1 %v873_v3 }
 0x2e3   : > { %v1852_v49 = vpop.eup %1315  ;;  %v602_v50 = vpop.xlane.xlu0 %601 }
 0x2e4   : > { %1325 = vpow2.f32 %v766_v59  ;;  %v686_v51 = vsub.f32 %v1662_v9, %v602_v50  ;;  %v687_v61 = vsub.f32 %v1664_v10, %v602_v50  ;;  %v876_v5 = vadd.f32 %v1852_v49, %v1850_v4 }
 0x2e5   : > { %1327 = vpow2.f32 %v768_v21  ;;  %v605_v7 = vpop.xlane.xlu1 %604 }
 0x2e6   : > { %v1858_v53 = vpop.eup %1317  ;;  %v770_v6 = vmul.f32 1.442695, %v686_v51  ;;  %v772_v20 = vmul.f32 1.442695, %v687_v61  ;;  %v688_v33 = vsub.f32 %v1666_v11, %v605_v7  ;;  %v689_v55 = vsub.f32 %v1670_v13, %v605_v7  ;;  %877 = vadd.xlane.f32.xlu0 %v876_v5 }
 0x2e7   : > { %v1862_v63 = vpop.eup %1319 }
 0x2e8   : > { %1329 = vpow2.f32 %v770_v6  ;;  %v774_v9 = vmul.f32 1.442695, %v688_v33  ;;  %v776_v0 = vmul.f32 1.442695, %v689_v55  ;;  %v879_v10 = vadd.f32 %v1862_v63, %v1858_v53 }
 0x2e9   : > { %1331 = vpow2.f32 %v772_v20 }
 0x2ea   : > { %v1866_v43 = vpop.eup %1321  ;;  %1333 = vpow2.f32 %v774_v9  ;;  %880 = vadd.xlane.f32.xlu1 %v879_v10 }
 0x2eb   : > { %v1868_v25 = vpop.eup %1323  ;;  %1335 = vpow2.f32 %v776_v0  ;;  %v608_v11 = vpop.xlane.xlu0 %607 }
 0x2ec   : > { %v690_v13 = vsub.f32 %v1674_v15, %v608_v11  ;;  %v691_v45 = vsub.f32 %v1676_v16, %v608_v11  ;;  %v882_v14 = vadd.f32 %v1868_v25, %v1866_v43 }
 0x2ed   : > { %v611_v3 = vpop.xlane.xlu1 %610 }
 0x2ee   : > { %v1874_v59 = vpop.eup %1325  ;;  %v778_v21 = vmul.f32 1.442695, %v690_v13  ;;  %v780_v50 = vmul.f32 1.442695, %v691_v45  ;;  %v692_v51 = vsub.f32 %v1678_v17, %v611_v3  ;;  %v693_v61 = vsub.f32 %v1682_v19, %v611_v3  ;;  %883 = vadd.xlane.f32.xlu0 %v882_v14 }
 0x2ef   : > { %v1878_v5 = vpop.eup %1327 }
 0x2f0   : > { %1337 = vpow2.f32 %v778_v21  ;;  %v782_v7 = vmul.f32 1.442695, %v692_v51  ;;  %v784_v15 = vmul.f32 1.442695, %v693_v61  ;;  %v885_v16 = vadd.f32 %v1878_v5, %v1874_v59 }
 0x2f1   : > { %1339 = vpow2.f32 %v780_v50 }
 0x2f2   : > { %v1882_v6 = vpop.eup %1329  ;;  %1341 = vpow2.f32 %v782_v7  ;;  %886 = vadd.xlane.f32.xlu1 %v885_v16 }
 0x2f3   : > { %v1884_v20 = vpop.eup %1331  ;;  %1343 = vpow2.f32 %v784_v15  ;;  %v614_v17 = vpop.xlane.xlu0 %613 }
 0x2f4   : > { %v1886_v33 = vpop.eup %1333  ;;  %v694_v19 = vsub.f32 %v1686_v22, %v614_v17  ;;  %v695_v55 = vsub.f32 %v1688_v23, %v614_v17  ;;  %v888_v9 = vadd.f32 %v1884_v20, %v1882_v6 }
 0x2f5   : > { %v1892_v0 = vpop.eup %1335  ;;  %v617_v10 = vpop.xlane.xlu1 %616 }
 0x2f6   : > { %v786_v11 = vmul.f32 1.442695, %v694_v19  ;;  %v788_v13 = vmul.f32 1.442695, %v695_v55  ;;  %v696_v45 = vsub.f32 %v1690_v24, %v617_v10  ;;  %v697_v14 = vsub.f32 %v1694_v26, %v617_v10  ;;  %889 = vadd.xlane.f32.xlu0 %v888_v9 }
 0x2f7   : > { %v891_v3 = vadd.f32 %v1892_v0, %v1886_v33 }
 0x2f8   : > { %1345 = vpow2.f32 %v786_v11  ;;  %v790_v22 = vmul.f32 1.442695, %v696_v45  ;;  %v792_v21 = vmul.f32 1.442695, %v697_v14 }
 0x2f9   : > { %1347 = vpow2.f32 %v788_v13  ;;  %892 = vadd.xlane.f32.xlu1 %v891_v3 }
 0x2fa   : > { %v1898_v23 = vpop.eup %1337  ;;  %1349 = vpow2.f32 %v790_v22 }
 0x2fb   : > { %v1900_v50 = vpop.eup %1339  ;;  %1351 = vpow2.f32 %v792_v21  ;;  %v620_v51 = vpop.xlane.xlu0 %619 }
 0x2fc   : > { %v1902_v61 = vpop.eup %1341  ;;  %v698_v24 = vsub.f32 %v1698_v28, %v620_v51  ;;  %v699_v26 = vsub.f32 %v1700_v29, %v620_v51  ;;  %v894_v7 = vadd.f32 %v1900_v50, %v1898_v23 }
 0x2fd   : > { %v1908_v15 = vpop.eup %1343  ;;  %v623_v16 = vpop.xlane.xlu1 %622 }
 0x2fe   : > { %v794_v17 = vmul.f32 1.442695, %v698_v24  ;;  %v796_v19 = vmul.f32 1.442695, %v699_v26  ;;  %v700_v55 = vsub.f32 %v1702_v30, %v623_v16  ;;  %v701_v9 = vsub.f32 %v1706_v32, %v623_v16  ;;  %895 = vadd.xlane.f32.xlu0 %v894_v7 }
 0x2ff   : > { %v897_v10 = vadd.f32 %v1908_v15, %v1902_v61 }
 0x300   : > { %1353 = vpow2.f32 %v794_v17  ;;  %v798_v28 = vmul.f32 1.442695, %v700_v55  ;;  %v800_v11 = vmul.f32 1.442695, %v701_v9 }
 0x301   : > { %1355 = vpow2.f32 %v796_v19  ;;  %898 = vadd.xlane.f32.xlu1 %v897_v10 }
 0x302   : > { %v1914_v29 = vpop.eup %1345  ;;  %1357 = vpow2.f32 %v798_v28 }
 0x303   : > { %v1916_v13 = vpop.eup %1347  ;;  %1359 = vpow2.f32 %v800_v11  ;;  %v626_v45 = vpop.xlane.xlu0 %625 }
 0x304   : > { %v1918_v14 = vpop.eup %1349  ;;  %v702_v30 = vsub.f32 %v1710_v34, %v626_v45  ;;  %v703_v32 = vsub.f32 %v1712_v35, %v626_v45  ;;  %v900_v3 = vadd.f32 %v1916_v13, %v1914_v29 }
 0x305   : > { %v1924_v22 = vpop.eup %1351  ;;  %v629_v21 = vpop.xlane.xlu1 %628 }
 0x306   : > { %v802_v51 = vmul.f32 1.442695, %v702_v30  ;;  %v804_v24 = vmul.f32 1.442695, %v703_v32  ;;  %v704_v26 = vsub.f32 %v1714_v36, %v629_v21  ;;  %v705_v7 = vsub.f32 %v1718_v38, %v629_v21  ;;  %901 = vadd.xlane.f32.xlu0 %v900_v3 }
 0x307   : > { %v903_v16 = vadd.f32 %v1924_v22, %v1918_v14 }
 0x308   : > { %1361 = vpow2.f32 %v802_v51  ;;  %v806_v34 = vmul.f32 1.442695, %v704_v26  ;;  %v808_v17 = vmul.f32 1.442695, %v705_v7 }
 0x309   : > { %1363 = vpow2.f32 %v804_v24  ;;  %904 = vadd.xlane.f32.xlu1 %v903_v16 }
 0x30a   : > { %v1930_v35 = vpop.eup %1353  ;;  %1365 = vpow2.f32 %v806_v34 }
 0x30b   : > { %v1932_v19 = vpop.eup %1355  ;;  %1367 = vpow2.f32 %v808_v17  ;;  %v632_v55 = vpop.xlane.xlu0 %631 }
 0x30c   : > { %v1934_v9 = vpop.eup %1357  ;;  %v706_v36 = vsub.f32 %v1722_v40, %v632_v55  ;;  %v707_v38 = vsub.f32 %v1724_v41, %v632_v55  ;;  %v906_v10 = vadd.f32 %v1932_v19, %v1930_v35 }
 0x30d   : > { %v1940_v28 = vpop.eup %1359  ;;  %v635_v11 = vpop.xlane.xlu1 %634 }
 0x30e   : > { %v810_v45 = vmul.f32 1.442695, %v706_v36  ;;  %v812_v30 = vmul.f32 1.442695, %v707_v38  ;;  %v708_v32 = vsub.f32 %v1726_v42, %v635_v11  ;;  %v709_v3 = vsub.f32 %v1730_v48, %v635_v11  ;;  %907 = vadd.xlane.f32.xlu0 %v906_v10 }
 0x30f   : > { %v909_v21 = vadd.f32 %v1940_v28, %v1934_v9 }
 0x310   : > { %1369 = vpow2.f32 %v810_v45  ;;  %v814_v40 = vmul.f32 1.442695, %v708_v32  ;;  %v816_v51 = vmul.f32 1.442695, %v709_v3 }
 0x311   : > { %1371 = vpow2.f32 %v812_v30  ;;  %910 = vadd.xlane.f32.xlu1 %v909_v21 }
 0x312   : > { %v1946_v41 = vpop.eup %1361  ;;  %1373 = vpow2.f32 %v814_v40 }
 0x313   : > { %v1948_v24 = vpop.eup %1363  ;;  %1375 = vpow2.f32 %v816_v51  ;;  %v638_v26 = vpop.xlane.xlu0 %637 }
 0x314   : > { %v1950_v7 = vpop.eup %1365  ;;  %v710_v42 = vsub.f32 %v1734_v54, %v638_v26  ;;  %v711_v48 = vsub.f32 %v1736_v58, %v638_v26  ;;  %v912_v16 = vadd.f32 %v1948_v24, %v1946_v41 }
 0x315   : > { %v1956_v34 = vpop.eup %1367  ;;  %v641_v17 = vpop.xlane.xlu1 %640 }
 0x316   : > { %v818_v55 = vmul.f32 1.442695, %v710_v42  ;;  %v820_v36 = vmul.f32 1.442695, %v711_v48  ;;  %v712_v38 = vsub.f32 %v1738_v60, %v641_v17  ;;  %v713_v10 = vsub.f32 %v1742_v2, %v641_v17  ;;  %913 = vadd.xlane.f32.xlu0 %v912_v16  ;;  %v2178_v48 = vld [vmem:[#allocation3_spill] sm:$0xff]  ;;  %v2179_v17 = vld [vmem:[#allocation4_spill] sm:$0xff] }
 0x317   : > { %v915_v11 = vadd.f32 %v1956_v34, %v1950_v7 }
 0x318   : > { %1377 = vpow2.f32 %v818_v55  ;;  %v822_v54 = vmul.f32 1.442695, %v712_v38  ;;  %v824_v45 = vmul.f32 1.442695, %v713_v10 }
 0x319   : > { %1379 = vpow2.f32 %v820_v36  ;;  %916 = vadd.xlane.f32.xlu1 %v915_v11 }
 0x31a   : > { %v1962_v58 = vpop.eup %1369  ;;  %1381 = vpow2.f32 %v822_v54 }
 0x31b   : > { %v1964_v30 = vpop.eup %1371  ;;  %1383 = vpow2.f32 %v824_v45  ;;  %v644_v32 = vpop.xlane.xlu0 %643  ;;  %v2183_v45 = vld [vmem:[#allocation5_spill] sm:$0xff] }
 0x31c   : > { %v1966_v3 = vpop.eup %1373  ;;  %v714_v60 = vsub.f32 %v1746_v8, %v644_v32  ;;  %v715_v2 = vsub.f32 %v1748_v12, %v644_v32  ;;  %v918_v21 = vadd.f32 %v1964_v30, %v1962_v58 }
 0x31d   : > { %v1972_v40 = vpop.eup %1375  ;;  %v647_v51 = vpop.xlane.xlu1 %646 }
 0x31e   : > { %v826_v26 = vmul.f32 1.442695, %v714_v60  ;;  %v828_v42 = vmul.f32 1.442695, %v715_v2  ;;  %v716_v16 = vsub.f32 %v2178_v48, %v647_v51  ;;  %v717_v55 = vsub.f32 %v2179_v17, %v647_v51  ;;  %919 = vadd.xlane.f32.xlu0 %v918_v21  ;;  %v2184_v60 = vld [vmem:[#allocation6_spill] sm:$0xff] }
 0x31f   : > { %v921_v36 = vadd.f32 %v1972_v40, %v1966_v3 }
 0x320   : > { %1385 = vpow2.f32 %v826_v26  ;;  %v830_v8 = vmul.f32 1.442695, %v716_v16  ;;  %v832_v38 = vmul.f32 1.442695, %v717_v55  ;;  %v2186_v16 = vld [vmem:[#allocation7_spill] sm:$0xff]  ;;  %v2187_v55 = vld [vmem:[#allocation8_spill] sm:$0xff] }
 0x321   : > { %1387 = vpow2.f32 %v828_v42  ;;  %922 = vadd.xlane.f32.xlu1 %v921_v36 }
 0x322   : > { %v1978_v12 = vpop.eup %1377  ;;  %1389 = vpow2.f32 %v830_v8 }
 0x323   : > { %2180 = vst [vmem:[#allocation3_spill] sm:$0xff] %v1978_v12  ;;  %v1980_v10 = vpop.eup %1379  ;;  %1391 = vpow2.f32 %v832_v38  ;;  %v650_v11 = vpop.xlane.xlu0 %649 }
 0x324   : > { %2181 = vst [vmem:[#allocation4_spill] sm:$0xff] %v1980_v10  ;;  %v1982_v54 = vpop.eup %1381  ;;  %v718_v32 = vsub.f32 %v2183_v45, %v650_v11  ;;  %v719_v2 = vsub.f32 %v2184_v60, %v650_v11  ;;  %v924_v21 = vadd.f32 %v1980_v10, %v1978_v12  ;;  %v2194_v12 = vld [vmem:[#allocation12_spill] sm:$0xff] }
 0x325   : > { %2182 = vst [vmem:[#allocation16_spill] sm:$0xff] %v1982_v54  ;;  %v1988_v51 = vpop.eup %1383  ;;  %v653_v26 = vpop.xlane.xlu1 %652 }
 0x326   : > { %2185 = vst [vmem:[#allocation5_spill] sm:$0xff] %v1988_v51  ;;  %v834_v42 = vmul.f32 1.442695, %v718_v32  ;;  %v836_v48 = vmul.f32 1.442695, %v719_v2  ;;  %v720_v17 = vsub.f32 %v2186_v16, %v653_v26  ;;  %v721_v36 = vsub.f32 %v2187_v55, %v653_v26  ;;  %925 = vadd.xlane.f32.xlu0 %v924_v21  ;;  %v2190_v16 = vld [vmem:[#allocation9_spill] sm:$0xff] }
 0x327   : > { %v927_v8 = vadd.f32 %v1988_v51, %v1982_v54  ;;  %v2191_v21 = vld [vmem:[#allocation10_spill] sm:$0xff]  ;;  %v2193_v54 = vld [vmem:[#allocation11_spill] sm:$0xff] }
 0x328   : > { %1393 = vpow2.f32 %v834_v42  ;;  %v838_v38 = vmul.f32 1.442695, %v720_v17  ;;  %v840_v45 = vmul.f32 1.442695, %v721_v36 }
 0x329   : > { %1395 = vpow2.f32 %v836_v48  ;;  %928 = vadd.xlane.f32.xlu1 %v927_v8 }
 0x32a   : > { %v1994_v11 = vpop.eup %1385  ;;  %1397 = vpow2.f32 %v838_v38 }
 0x32b   : > { %2188 = vst [vmem:[#allocation6_spill] sm:$0xff] %v1994_v11  ;;  %v1996_v60 = vpop.eup %1387  ;;  %1399 = vpow2.f32 %v840_v45  ;;  %v656_v32 = vpop.xlane.xlu0 %655 }
 0x32c   : > { %v1998_v2 = vpop.eup %1389  ;;  %v722_v26 = vsub.f32 %v2190_v16, %v656_v32  ;;  %v723_v55 = vsub.f32 %v2191_v21, %v656_v32  ;;  %v930_v42 = vadd.f32 %v1996_v60, %v1994_v11 }
 0x32d   : > { %2189 = vst [vmem:[#allocation7_spill] sm:$0xff] %v1998_v2  ;;  %v2004_v17 = vpop.eup %1391  ;;  %v659_v48 = vpop.xlane.xlu1 %658 }
 0x32e   : > { %2192 = vst [vmem:[#allocation8_spill] sm:$0xff] %v2004_v17  ;;  %v842_v36 = vmul.f32 1.442695, %v722_v26  ;;  %v844_v8 = vmul.f32 1.442695, %v723_v55  ;;  %v724_v38 = vsub.f32 %v2193_v54, %v659_v48  ;;  %v725_v51 = vsub.f32 %v2194_v12, %v659_v48  ;;  %931 = vadd.xlane.f32.xlu0 %v930_v42  ;;  %v2195_v54 = vld [vmem:[#allocation13_spill] sm:$0xff] }
 0x32f   : > { %v933_v45 = vadd.f32 %v2004_v17, %v1998_v2  ;;  %v2196_v42 = vld [vmem:[#allocation14_spill] sm:$0xff]  ;;  %v2197_v2 = vld [vmem:[#allocation15_spill] sm:$0xff] }
 0x330   : > { %1401 = vpow2.f32 %v842_v36  ;;  %v846_v16 = vmul.f32 1.442695, %v724_v38  ;;  %v848_v10 = vmul.f32 1.442695, %v725_v51 }
 0x331   : > { %1403 = vpow2.f32 %v844_v8  ;;  %934 = vadd.xlane.f32.xlu1 %v933_v45 }
 0x332   : > { %v2010_v32 = vpop.eup %1393  ;;  %1405 = vpow2.f32 %v846_v16 }
 0x333   : > { %v2012_v21 = vpop.eup %1395  ;;  %1407 = vpow2.f32 %v848_v10  ;;  %v662_v26 = vpop.xlane.xlu0 %661 }
 0x334   : > { %v2014_v55 = vpop.eup %1397  ;;  %v726_v12 = vsub.f32 %v2195_v54, %v662_v26  ;;  %v727_v48 = vsub.f32 %v2196_v42, %v662_v26  ;;  %v936_v36 = vadd.f32 %v2012_v21, %v2010_v32 }
 0x335   : > { %v2020_v38 = vpop.eup %1399  ;;  %v665_v51 = vpop.xlane.xlu1 %664 }
 0x336   : > { %v850_v8 = vmul.f32 1.442695, %v726_v12  ;;  %v852_v45 = vmul.f32 1.442695, %v727_v48  ;;  %937 = vadd.xlane.f32.xlu0 %v936_v36  ;;  %v728_v16 = vsub.f32 %v1786_v46, %v665_v51  ;;  %v729_v10 = vsub.f32 %v2197_v2, %v665_v51 }
 0x337   : > { %v939_v11 = vadd.f32 %v2020_v38, %v2014_v55 }
 0x338   : > { %1409 = vpow2.f32 %v850_v8  ;;  %v854_v54 = vmul.f32 1.442695, %v728_v16  ;;  %v856_v17 = vmul.f32 1.442695, %v729_v10 }
 0x339   : > { %1411 = vpow2.f32 %v852_v45  ;;  %940 = vadd.xlane.f32.xlu1 %v939_v11 }
 0x33a   : > { %v2026_v26 = vpop.eup %1401  ;;  %1413 = vpow2.f32 %v854_v54 }
 0x33b   : > { %2198 = vst [vmem:[#allocation9_spill] sm:$0xff] %v2026_v26  ;;  %v2028_v42 = vpop.eup %1403  ;;  %1415 = vpow2.f32 %v856_v17 }
 0x33c   : > { %v2030_v12 = vpop.eup %1405  ;;  %v942_v46 = vadd.f32 %v2028_v42, %v2026_v26 }
 0x33d   : > { %2199 = vst [vmem:[#allocation10_spill] sm:$0xff] %v2030_v12  ;;  %v2034_v2 = vpop.eup %1407 }
 0x33e   : > { %2200 = vst [vmem:[#allocation11_spill] sm:$0xff] %v2034_v2  ;;  %943 = vadd.xlane.f32.xlu0 %v942_v46  ;;  %v945_v48 = vadd.f32 %v2034_v2, %v2030_v12 }
 0x340   : > { %946 = vadd.xlane.f32.xlu1 %v945_v48 }
 0x342   : > { %v2038_v36 = vpop.eup %1409 }
 0x343   : > { %2201 = vst [vmem:[#allocation12_spill] sm:$0xff] %v2038_v36  ;;  %v2040_v11 = vpop.eup %1411 }
 0x344   : > { %2202 = vst [vmem:[#allocation13_spill] sm:$0xff] %v2040_v11  ;;  %v2042_v51 = vpop.eup %1413  ;;  %v948_v17 = vadd.f32 %v2040_v11, %v2038_v36 }
 0x345   : > { %2203 = vst [vmem:[#allocation14_spill] sm:$0xff] %v2042_v51  ;;  %v2046_v8 = vpop.eup %1415 }
 0x346   : > { %2204 = vst [vmem:[#allocation15_spill] sm:$0xff] %v2046_v8  ;;  %949 = vadd.xlane.f32.xlu0 %v948_v17  ;;  %v951_v45 = vadd.f32 %v2046_v8, %v2042_v51 }
 0x348   : > { %952 = vadd.xlane.f32.xlu1 %v951_v45 }
 0x35b   : > { %v860_v16 = vpop.xlane.xlu0 %859 }
 0x35c   : > { %1417 = vrcp.f32 %v860_v16 }
 0x35d   : > { %v863_v10 = vpop.xlane.xlu1 %862 }
 0x35e   : > { %1419 = vrcp.f32 %v863_v10 }
 0x363   : > { %v866_v54 = vpop.xlane.xlu0 %865 }
 0x364   : > { %1421 = vrcp.f32 %v866_v54 }
 0x366   : > { %v1418_v46 = vpop.eup %1417 }
 0x367   : > { %v869_v48 = vpop.xlane.xlu1 %868  ;;  %v987_v26 = vmul.f32 %v1418_v46, %v1804_v27  ;;  %v986_v17 = vmul.f32 %v1418_v46, %v1802_v47 }
 0x368   : > { %v1420_v12 = vpop.eup %1419  ;;  %1423 = vrcp.f32 %v869_v48 }
 0x369   : > { %v989_v36 = vmul.f32 %v1420_v12, %v1812_v31  ;;  %v988_v11 = vmul.f32 %v1420_v12, %v1806_v52 }
 0x36b   : > { %v872_v51 = vpop.xlane.xlu0 %871  ;;  %v1051_v45 = vpack.c.bf16 %v989_v36, %v987_v26  ;;  %v1050_v8 = vpack.c.bf16 %v988_v11, %v986_v17 }
 0x36c   : > { %1425 = vrcp.f32 %v872_v51 }
 0x36d   : > { %1100 = vmatprep.subr.bf16.mxu0 %v1051_v45 }
 0x36e   : > { %1101 = vmatpush1.bf16.msra.mxu0 %v1050_v8  ;;  %v1422_v10 = vpop.eup %1421 }
 0x36f   : > { %v875_v16 = vpop.xlane.xlu1 %874  ;;  %v991_v48 = vmul.f32 %v1422_v10, %v1820_v44  ;;  %v990_v31 = vmul.f32 %v1422_v10, %v1818_v56 }
 0x370   : > { %1427 = vrcp.f32 %v875_v16 }
 0x372   : > { %v1424_v54 = vpop.eup %1423 }
 0x373   : > { %v878_v2 = vpop.xlane.xlu0 %877  ;;  %v993_v27 = vmul.f32 %v1424_v54, %v1828_v39  ;;  %v992_v47 = vmul.f32 %v1424_v54, %v1826_v57 }
 0x374   : > { %1429 = vrcp.f32 %v878_v2 }
 0x375   : > { %v1053_v52 = vpack.c.bf16 %v993_v27, %v991_v48  ;;  %v1052_v12 = vpack.c.bf16 %v992_v47, %v990_v31 }
 0x376   : > { %v1426_v36 = vpop.eup %1425 }
 0x377   : > { %1102 = vmatprep.subr.bf16.mxu0 %v1053_v52  ;;  %v881_v26 = vpop.xlane.xlu1 %880  ;;  %v995_v8 = vmul.f32 %v1426_v36, %v1836_v37  ;;  %v994_v39 = vmul.f32 %v1426_v36, %v1834_v62 }
 0x378   : > { %1431 = vrcp.f32 %v881_v26  ;;  %1103 = vmatpush1.bf16.msra.mxu0 %v1052_v12 }
 0x37a   : > { %v1428_v11 = vpop.eup %1427 }
 0x37b   : > { %v884_v51 = vpop.xlane.xlu0 %883  ;;  %v997_v44 = vmul.f32 %v1428_v11, %v1844_v18  ;;  %v996_v56 = vmul.f32 %v1428_v11, %v1842_v1 }
 0x37c   : > { %1433 = vrcp.f32 %v884_v51 }
 0x37d   : > { %v1055_v46 = vpack.c.bf16 %v997_v44, %v995_v8  ;;  %v1054_v57 = vpack.c.bf16 %v996_v56, %v994_v39 }
 0x37e   : > { %v1430_v17 = vpop.eup %1429 }
 0x37f   : > { %1104 = vmatprep.subr.bf16.mxu0 %v1055_v46  ;;  %v887_v2 = vpop.xlane.xlu1 %886  ;;  %v999_v10 = vmul.f32 %v1430_v17, %v1852_v49  ;;  %v998_v18 = vmul.f32 %v1430_v17, %v1850_v4 }
 0x380   : > { %1435 = vrcp.f32 %v887_v2  ;;  %1105 = vmatpush1.bf16.msra.mxu0 %v1054_v57 }
 0x382   : > { %v1432_v45 = vpop.eup %1431 }
 0x383   : > { %v890_v16 = vpop.xlane.xlu0 %889  ;;  %v1001_v37 = vmul.f32 %v1432_v45, %v1862_v63  ;;  %v1000_v62 = vmul.f32 %v1432_v45, %v1858_v53 }
 0x384   : > { %1437 = vrcp.f32 %v890_v16 }
 0x385   : > { %v1057_v1 = vpack.c.bf16 %v1001_v37, %v999_v10  ;;  %v1056_v54 = vpack.c.bf16 %v1000_v62, %v998_v18 }
 0x386   : > { %v893_v48 = vpop.xlane.xlu1 %892  ;;  %v1434_v27 = vpop.eup %1433 }
 0x387   : > { %1439 = vrcp.f32 %v893_v48  ;;  %1106 = vmatprep.subr.bf16.mxu0 %v1057_v1  ;;  %v1003_v52 = vmul.f32 %v1434_v27, %v1868_v25  ;;  %v1002_v63 = vmul.f32 %v1434_v27, %v1866_v43 }
 0x388   : > { %1107 = vmatpush1.bf16.msra.mxu0 %v1056_v54 }
 0x38a   : > { %v1436_v31 = vpop.eup %1435 }
 0x38b   : > { %v896_v47 = vpop.xlane.xlu0 %895  ;;  %v1005_v49 = vmul.f32 %v1436_v31, %v1878_v5  ;;  %v1004_v4 = vmul.f32 %v1436_v31, %v1874_v59 }
 0x38c   : > { %1441 = vrcp.f32 %v896_v47 }
 0x38d   : > { %v1059_v53 = vpack.c.bf16 %v1005_v49, %v1003_v52  ;;  %v1058_v12 = vpack.c.bf16 %v1004_v4, %v1002_v63 }
 0x38e   : > { %v899_v26 = vpop.xlane.xlu1 %898  ;;  %v1438_v36 = vpop.eup %1437 }
 0x38f   : > { %1443 = vrcp.f32 %v899_v26  ;;  %1108 = vmatprep.subr.bf16.mxu0 %v1059_v53  ;;  %v1007_v51 = vmul.f32 %v1438_v36, %v1884_v20  ;;  %v1006_v25 = vmul.f32 %v1438_v36, %v1882_v6 }
 0x390   : > { %1109 = vmatpush1.bf16.msra.mxu0 %v1058_v12 }
 0x391   : > { %v1440_v11 = vpop.eup %1439 }
 0x392   : > { %v1009_v8 = vmul.f32 %v1440_v11, %v1892_v0  ;;  %v1008_v5 = vmul.f32 %v1440_v11, %v1886_v33 }
 0x393   : > { %v902_v43 = vpop.xlane.xlu0 %901 }
 0x394   : > { %v1061_v44 = vpack.c.bf16 %v1009_v8, %v1007_v51  ;;  %v1060_v59 = vpack.c.bf16 %v1008_v5, %v1006_v25  ;;  %1445 = vrcp.f32 %v902_v43 }
 0x396   : > { %1110 = vmatprep.subr.bf16.mxu0 %v1061_v44  ;;  %v905_v39 = vpop.xlane.xlu1 %904  ;;  %v1442_v56 = vpop.eup %1441 }
 0x397   : > { %1447 = vrcp.f32 %v905_v39  ;;  %1111 = vmatpush1.bf16.msra.mxu0 %v1060_v59  ;;  %v1011_v57 = vmul.f32 %v1442_v56, %v1900_v50  ;;  %v1010_v0 = vmul.f32 %v1442_v56, %v1898_v23  ;;  %v2205_v59 = vld [vmem:[#allocation4_spill] sm:$0xff]  ;;  %v2206_v56 = vld [vmem:[#allocation5_spill] sm:$0xff] }
 0x399   : > { %v1444_v46 = vpop.eup %1443 }
 0x39a   : > { %v1013_v20 = vmul.f32 %v1444_v46, %v1908_v15  ;;  %v1012_v6 = vmul.f32 %v1444_v46, %v1902_v61  ;;  %v2207_v46 = vld [vmem:[#allocation3_spill] sm:$0xff] }
 0x39b   : > { %v908_v2 = vpop.xlane.xlu0 %907 }
 0x39c   : > { %v1063_v33 = vpack.c.bf16 %v1013_v20, %v1011_v57  ;;  %v1062_v17 = vpack.c.bf16 %v1012_v6, %v1010_v0  ;;  %1449 = vrcp.f32 %v908_v2  ;;  %v2208_v57 = vld [vmem:[#allocation16_spill] sm:$0xff] }
 0x39e   : > { %1112 = vmatprep.subr.bf16.mxu0 %v1063_v33  ;;  %v911_v45 = vpop.xlane.xlu1 %910  ;;  %v1446_v16 = vpop.eup %1445 }
 0x39f   : > { %1451 = vrcp.f32 %v911_v45  ;;  %1113 = vmatpush1.bf16.msra.mxu0 %v1062_v17  ;;  %v1015_v37 = vmul.f32 %v1446_v16, %v1916_v13  ;;  %v1014_v15 = vmul.f32 %v1446_v16, %v1914_v29  ;;  %v2209_v45 = vld [vmem:[#allocation8_spill] sm:$0xff] }
 0x3a1   : > { %v1448_v10 = vpop.eup %1447 }
 0x3a2   : > { %v1017_v50 = vmul.f32 %v1448_v10, %v1924_v22  ;;  %v1016_v23 = vmul.f32 %v1448_v10, %v1918_v14  ;;  %v2210_v10 = vld [vmem:[#allocation6_spill] sm:$0xff] }
 0x3a3   : > { %v914_v18 = vpop.xlane.xlu0 %913 }
 0x3a4   : > { %v1065_v61 = vpack.c.bf16 %v1017_v50, %v1015_v37  ;;  %v1064_v62 = vpack.c.bf16 %v1016_v23, %v1014_v15  ;;  %1453 = vrcp.f32 %v914_v18  ;;  %v2211_v50 = vld [vmem:[#allocation7_spill] sm:$0xff] }
 0x3a6   : > { %1114 = vmatprep.subr.bf16.mxu0 %v1065_v61  ;;  %v917_v1 = vpop.xlane.xlu1 %916  ;;  %v1450_v54 = vpop.eup %1449 }
 0x3a7   : > { %1455 = vrcp.f32 %v917_v1  ;;  %1115 = vmatpush1.bf16.msra.mxu0 %v1064_v62  ;;  %v1019_v27 = vmul.f32 %v1450_v54, %v1932_v19  ;;  %v1018_v22 = vmul.f32 %v1450_v54, %v1930_v35 }
 0x3a9   : > { %v1452_v48 = vpop.eup %1451 }
 0x3aa   : > { %v1021_v13 = vmul.f32 %v1452_v48, %v1940_v28  ;;  %v1020_v29 = vmul.f32 %v1452_v48, %v1934_v9 }
 0x3ab   : > { %v920_v31 = vpop.xlane.xlu0 %919 }
 0x3ac   : > { %v1067_v14 = vpack.c.bf16 %v1021_v13, %v1019_v27  ;;  %v1066_v47 = vpack.c.bf16 %v1020_v29, %v1018_v22  ;;  %1457 = vrcp.f32 %v920_v31 }
 0x3ae   : > { %1116 = vmatprep.subr.bf16.mxu0 %v1067_v14  ;;  %v923_v52 = vpop.xlane.xlu1 %922  ;;  %v1454_v49 = vpop.eup %1453 }
 0x3af   : > { %1459 = vrcp.f32 %v923_v52  ;;  %1117 = vmatpush1.bf16.msra.mxu0 %v1066_v47  ;;  %v1023_v4 = vmul.f32 %v1454_v49, %v1948_v24  ;;  %v1022_v28 = vmul.f32 %v1454_v49, %v1946_v41 }
 0x3b1   : > { %v1456_v63 = vpop.eup %1455 }
 0x3b2   : > { %v1025_v19 = vmul.f32 %v1456_v63, %v1956_v34  ;;  %v1024_v35 = vmul.f32 %v1456_v63, %v1950_v7  ;;  %v2212_v63 = vld [vmem:[#allocation11_spill] sm:$0xff] }
 0x3b3   : > { %v926_v53 = vpop.xlane.xlu0 %925 }
 0x3b4   : > { %v1069_v9 = vpack.c.bf16 %v1025_v19, %v1023_v4  ;;  %v1068_v12 = vpack.c.bf16 %v1024_v35, %v1022_v28  ;;  %1461 = vrcp.f32 %v926_v53  ;;  %v2213_v4 = vld [vmem:[#allocation9_spill] sm:$0xff]  ;;  %v2214_v19 = vld [vmem:[#allocation10_spill] sm:$0xff] }
 0x3b5   : > { %v2215_v53 = vld [vmem:[#allocation2_spill] sm:$0xff] }
 0x3b6   : > { %1118 = vmatprep.subr.bf16.mxu0 %v1069_v9  ;;  %v929_v26 = vpop.xlane.xlu1 %928  ;;  %v1458_v36 = vpop.eup %1457  ;;  %v1083_v9 = vshrl.u32 %v2215_v53, 16 }
 0x3b7   : > { %1463 = vrcp.f32 %v929_v26  ;;  %1119 = vmatpush1.bf16.msra.mxu0 %v1068_v12  ;;  %v1027_v51 = vmul.f32 %v1458_v36, %v1964_v30  ;;  %v1026_v34 = vmul.f32 %v1458_v36, %v1962_v58  ;;  %v1086_v12 = vshll.u32 %v2215_v53, 16  ;;  %v2216_v36 = vld [vmem:[#allocation13_spill] sm:$0xff] }
 0x3b9   : > { %v1460_v11 = vpop.eup %1459 }
 0x3ba   : > { %v1029_v24 = vmul.f32 %v1460_v11, %v1972_v40  ;;  %v1028_v41 = vmul.f32 %v1460_v11, %v1966_v3 }
 0x3bb   : > { %v932_v8 = vpop.xlane.xlu0 %931 }
 0x3bc   : > { %v1071_v7 = vpack.c.bf16 %v1029_v24, %v1027_v51  ;;  %v1070_v25 = vpack.c.bf16 %v1028_v41, %v1026_v34  ;;  %1465 = vrcp.f32 %v932_v8  ;;  %v2217_v51 = vld [vmem:[#allocation15_spill] sm:$0xff]  ;;  %v2218_v24 = vld [vmem:[#allocation12_spill] sm:$0xff]  ;;  %v2219_v41 = vld [vmem:[#allocation14_spill] sm:$0xff] }
 0x3be   : > { %1120 = vmatprep.subr.bf16.mxu0 %v1071_v7  ;;  %v935_v5 = vpop.xlane.xlu1 %934  ;;  %v1462_v43 = vpop.eup %1461  ;;  %v1085_v7 = vrot.slane %v1083_v9, 1 }
 0x3bf   : > { %1467 = vrcp.f32 %v935_v5  ;;  %1121 = vmatpush1.bf16.msra.mxu0 %v1070_v25  ;;  %v1031_v39 = vmul.f32 %v1462_v43, %v2205_v59  ;;  %v1030_v40 = vmul.f32 %v1462_v43, %v2207_v46  ;;  %v1088_v25 = vrot.slane %v1086_v12, 2 }
 0x3c1   : > { %v1464_v44 = vpop.eup %1463 }
 0x3c2   : > { %v1033_v30 = vmul.f32 %v1464_v44, %v2206_v56  ;;  %v1032_v58 = vmul.f32 %v1464_v44, %v2208_v57  ;;  %v1089_v44 = vor.u32 %v1088_v25, %v1085_v7 }
 0x3c3   : > { %v938_v20 = vpop.xlane.xlu0 %937 }
 0x3c4   : > { %v1073_v3 = vpack.c.bf16 %v1033_v30, %v1031_v39  ;;  %v1072_v0 = vpack.c.bf16 %v1032_v58, %v1030_v40  ;;  %1469 = vrcp.f32 %v938_v20  ;;  %v1481_v40 = vld [vmem:[%s1560_s21] sm:$0x77] }
 0x3c6   : > { %1122 = vmatprep.subr.bf16.mxu0 %v1073_v3  ;;  %v941_v6 = vpop.xlane.xlu1 %940  ;;  %v1466_v2 = vpop.eup %1465 }
 0x3c7   : > { %1471 = vrcp.f32 %v941_v6  ;;  %1123 = vmatpush1.bf16.msra.mxu0 %v1072_v0  ;;  %v1035_v17 = vmul.f32 %v1466_v2, %v1996_v60  ;;  %v1034_v37 = vmul.f32 %v1466_v2, %v2210_v10 }
 0x3c9   : > { %v1468_v33 = vpop.eup %1467 }
 0x3ca   : > { %v1037_v16 = vmul.f32 %v1468_v33, %v2209_v45  ;;  %v1036_v15 = vmul.f32 %v1468_v33, %v2211_v50 }
 0x3cb   : > { %v944_v23 = vpop.xlane.xlu0 %943 }
 0x3cc   : > { %1473 = vrcp.f32 %v944_v23  ;;  %v1075_v18 = vpack.c.bf16 %v1037_v16, %v1035_v17  ;;  %v1074_v61 = vpack.c.bf16 %v1036_v15, %v1034_v37 }
 0x3cd   : > { %v947_v62 = vpop.xlane.xlu1 %946 }
 0x3ce   : > { %1124 = vmatprep.subr.bf16.mxu0 %v1075_v18  ;;  %1475 = vrcp.f32 %v947_v62  ;;  %v1470_v1 = vpop.eup %1469 }
 0x3cf   : > { %1125 = vmatpush1.bf16.msra.mxu0 %v1074_v61  ;;  %v1039_v48 = vmul.f32 %v1470_v1, %v2012_v21  ;;  %v1038_v27 = vmul.f32 %v1470_v1, %v2010_v32 }
 0x3d1   : > { %v1472_v54 = vpop.eup %1471 }
 0x3d2   : > { %v1041_v60 = vmul.f32 %v1472_v54, %v2020_v38  ;;  %v1040_v13 = vmul.f32 %v1472_v54, %v2014_v55 }
 0x3d3   : > { %v950_v22 = vpop.xlane.xlu0 %949 }
 0x3d4   : > { %1477 = vrcp.f32 %v950_v22  ;;  %v1077_v29 = vpack.c.bf16 %v1041_v60, %v1039_v48  ;;  %v1076_v31 = vpack.c.bf16 %v1040_v13, %v1038_v27 }
 0x3d5   : > { %v953_v14 = vpop.xlane.xlu1 %952 }
 0x3d6   : > { %v1474_v47 = vpop.eup %1473  ;;  %1126 = vmatprep.subr.bf16.mxu0 %v1077_v29  ;;  %1479 = vrcp.f32 %v953_v14 }
 0x3d7   : > { %1127 = vmatpush1.bf16.msra.mxu0 %v1076_v31  ;;  %v1043_v49 = vmul.f32 %v1474_v47, %v2028_v42  ;;  %v1042_v38 = vmul.f32 %v1474_v47, %v2213_v4 }
 0x3d8   : > { %v1476_v52 = vpop.eup %1475 }
 0x3d9   : > { %v1045_v21 = vmul.f32 %v1476_v52, %v2212_v63  ;;  %v1044_v32 = vmul.f32 %v1476_v52, %v2214_v19 }
 0x3db   : > { %v1079_v28 = vpack.c.bf16 %v1045_v21, %v1043_v49  ;;  %v1078_v55 = vpack.c.bf16 %v1044_v32, %v1042_v38 }
 0x3dd   : > { %1128 = vmatprep.subr.bf16.mxu0 %v1079_v28 }
 0x3de   : > { %v1478_v35 = vpop.eup %1477  ;;  %1129 = vmatpush1.bf16.msra.mxu0 %v1078_v55 }
 0x3df   : > { %v1047_v11 = vmul.f32 %v1478_v35, %v2216_v36  ;;  %v1046_v34 = vmul.f32 %v1478_v35, %v2218_v24 }
 0x3e0   : > { %v1480_v26 = vpop.eup %1479 }
 0x3e1   : > { %v1049_v42 = vmul.f32 %v1480_v26, %v2217_v51  ;;  %v1048_v8 = vmul.f32 %v1480_v26, %v2219_v41 }
 0x3e3   : > { %v1081_v5 = vpack.c.bf16 %v1049_v42, %v1047_v11  ;;  %v1080_v43 = vpack.c.bf16 %v1048_v8, %v1046_v34 }
 0x3e5   : > { %1130 = vmatprep.subr.bf16.mxu0 %v1081_v5 }
 0x3e6   : > { %1131 = vmatpush1.bf16.msra.mxu0 %v1080_v43 }
 0x3e9   : > { %1133 = vmatmul.mubr.bf16.vlgmr.msra.gmra.mrb[4].mxu0 %v1089_v44 }
 0x4bc   : > { %v1134_v59 = vpop.f32.mrb[4].mxu0 }
 0x4bd   : > { %v1136_v39 = vpop.f32.mrb[5].mxu0 }
 0x4be   : > { %v1147_v56 = vcombine.low %v1134_v59, %v1136_v39  ;;  %v1138_v30 = vpop.f32.mrb[6].mxu0 }
 0x4bf   : > { %v1139_v46 = vpop.f32.mrb[7].mxu0 }
 0x4c0   : > { %v1149_v57 = vadd.f32 %v1481_v40, %v1147_v56 }
 0x4c2   : > { %1150 = vst [vmem:[%s182_s26] sm:$0x77] %v1149_v57 }
 0x4c3 PF: > { %s13_s14 = sadd.s32 1, %s1504_s14   ;;  %s2220_s12 = smov %s1500_s13 }
 0x4c4   : > { %p10_p5 = scmp.ge.s32.totalorder %s13_s14, 4   ;;  %s2221_s13 = smov %s2223_s15 }
 0x4c6   :  { %12 = sbr.rel (!%p10_p5) target bundleno = 2 (0x2), region = 71 }

</bundles_post_ra>
